<compile_context>
chip_gen: v6e
topology: v6e:2x2x1
jax: 0.10.0
libtpu: 0.0.40
codegen_flags: <defaults>
</compile_context>

<pallas_src>
import functools

import jax
import jax.numpy as jnp
from jax import lax
from jax.experimental import pallas as pl
from jax.experimental.pallas import tpu as pltpu


# ---------------------------------------------------------------------------
# Pallas kernel: one (batch, query-tile) per grid step, whole layer fused.
# ---------------------------------------------------------------------------
def _encoder_layer_kernel(*refs, n_head, d_k, d_v, eps, has_mask, has_xf,
                          return_attn, compute_dtype, approx_recip):
    it = iter(refs)
    xq_ref = next(it)                          # [1, tq, D] query-tile rows of x
    xf_ref = next(it) if has_xf else xq_ref    # [1, L,  D] full sequence (K/V)
    mask_ref = next(it) if has_mask else None  # [1, tq, L] int8 (0 = masked)
    wq_ref, wkv_ref, wfc_ref = next(it), next(it), next(it)
    ln1_g_ref, ln1_b_ref = next(it), next(it)
    w1_ref, b1_ref, w2_ref, b2_ref = next(it), next(it), next(it), next(it)
    ln2_g_ref, ln2_b_ref = next(it), next(it)
    out_ref = next(it)
    attn_ref = next(it) if return_attn else None

    f32 = jnp.float32
    H, dk, dv = n_head, d_k, d_v

    x_tile = xq_ref[0].astype(f32)             # [tq, D] residual path, f32
    xq_c = x_tile.astype(compute_dtype)
    xf_c = xf_ref[0].astype(compute_dtype)     # [L, D]

    # Q for the query tile only (1/sqrt(d_k) pre-folded into wq by the
    # wrapper); K and V fused into a single wide MXU pass over the sequence.
    q_all = jnp.dot(xq_c, wq_ref[...], preferred_element_type=f32)    # [tq,H*dk]
    kv_all = jnp.dot(xf_c, wkv_ref[...], preferred_element_type=f32)  # [L,H*(dk+dv)]
    k_all = kv_all[:, :H * dk]
    v_all = kv_all[:, H * dk:]

    if has_mask:
        # hoisted out of the head loop: one compare, reused per head
        masked = mask_ref[0].astype(f32) == 0.0                        # [tq, L]

    heads = []
    for h in range(H):                        # static unroll (n_head is small)
        qh = q_all[:, h * dk:(h + 1) * dk].astype(compute_dtype)
        kh = k_all[:, h * dk:(h + 1) * dk].astype(compute_dtype)
        vh = v_all[:, h * dv:(h + 1) * dv].astype(compute_dtype)

        # scores = (q / sqrt(dk)) @ k.T   (scale already folded into wq)
        s = lax.dot_general(qh, kh, (((1,), (1,)), ((), ())),
                            preferred_element_type=f32)                # [tq, L]
        if has_mask:
            s = jnp.where(masked, f32(-1e9), s)                        # masked_fill
        s = s - jnp.max(s, axis=-1, keepdims=True)
        e = jnp.exp(s)
        p = e * pl.reciprocal(jnp.sum(e, axis=-1, keepdims=True),
                              approx=approx_recip)                     # softmax
        if return_attn:
            attn_ref[0, h] = p.astype(attn_ref.dtype)
        heads.append(jnp.dot(p.astype(compute_dtype), vh,
                             preferred_element_type=f32))              # [tq, dv]

    # concat heads -> ONE output-projection matmul with K = H*dv
    o_cat = jnp.concatenate(heads, axis=-1)                            # [tq, H*dv]
    attn_out = jnp.dot(o_cat.astype(compute_dtype), wfc_ref[...],
                       preferred_element_type=f32)                     # [tq, D]

    # residual + post-LayerNorm (rsqrt -> EUP slot)
    y = attn_out + x_tile
    mu = jnp.mean(y, axis=-1, keepdims=True)
    var = jnp.mean(jnp.square(y - mu), axis=-1, keepdims=True)
    y = (y - mu) * lax.rsqrt(var + eps) * ln1_g_ref[...] + ln1_b_ref[...]

    # position-wise FFN: w2(relu(w1(y))) + residual, then LayerNorm
    h1 = jnp.dot(y.astype(compute_dtype), w1_ref[...],
                 preferred_element_type=f32) + b1_ref[...]
    h1 = jnp.maximum(h1, 0.0)
    h2 = jnp.dot(h1.astype(compute_dtype), w2_ref[...],
                 preferred_element_type=f32) + b2_ref[...]
    z = h2 + y
    mu2 = jnp.mean(z, axis=-1, keepdims=True)
    var2 = jnp.mean(jnp.square(z - mu2), axis=-1, keepdims=True)
    z = (z - mu2) * lax.rsqrt(var2 + eps) * ln2_g_ref[...] + ln2_b_ref[...]

    out_ref[0] = z.astype(out_ref.dtype)


# ---------------------------------------------------------------------------
# Wrapper
# ---------------------------------------------------------------------------
def encoder_layer(x, params, mask=None, *, n_head, d_k, d_v, eps=1e-6,
                  compute_dtype=jnp.bfloat16, attn_dtype=jnp.bfloat16,
                  return_attn=True, q_block=None, approx_recip=None):
    """x: [B, L, d_model].  mask: optional [B, L, L]; 0 = masked out.

    compute_dtype : dtype of MXU operands (bf16 on v6e/v7x; f32 for exact).
    attn_dtype    : storage dtype of the returned attention probabilities.
    return_attn   : if False, skip the [B,H,L,L] attention writeback entirely.
    q_block       : query-tile length (defaults to 256/128/L).
    """
    B, L, D = x.shape
    d_inner = params["w1"].shape[1]
    has_mask = mask is not None
    if approx_recip is None:
        approx_recip = compute_dtype != jnp.float32

    # query-tile selection (keeps per-step VMEM O(tq*L); tq=L for short seqs)
    if q_block is not None:
        tq = int(q_block)
    elif L > 256 and L % 256 == 0:
        tq = 256
    elif L > 128 and L % 128 == 0:
        tq = 128
    else:
        tq = L
    assert L % tq == 0, "sequence length must be divisible by the query tile"
    n_qt = L // tq
    has_xf = n_qt > 1

    # weight fusion / pre-scaling (trace-time, free)
    wq_s = (params["wq"] * (1.0 / (d_k ** 0.5))).astype(compute_dtype)
    wkv = jnp.concatenate([params["wk"], params["wv"]], axis=1).astype(compute_dtype)
    wfc = params["wfc"].astype(compute_dtype)
    w1 = params["w1"].astype(compute_dtype)
    w2 = params["w2"].astype(compute_dtype)

    kernel = functools.partial(
        _encoder_layer_kernel, n_head=n_head, d_k=d_k, d_v=d_v, eps=eps,
        has_mask=has_mask, has_xf=has_xf, return_attn=return_attn,
        compute_dtype=compute_dtype, approx_recip=approx_recip)

    def const(shape):
        # Constant block index every step -> fetched once, stays resident.
        # (pipeline_mode=pl.Buffered(1) would also drop the redundant second
        #  buffer of these weight blocks; left at default for portability.)
        return pl.BlockSpec(shape, lambda b, q: (0,) * len(shape))

    inputs = [x]
    in_specs = [pl.BlockSpec((1, tq, D), lambda b, q: (b, q, 0))]        # x (q tile)
    if has_xf:
        inputs.append(x)                                                 # x (full, K/V)
        in_specs.append(pl.BlockSpec((1, L, D), lambda b, q: (b, 0, 0)))
    if has_mask:
        inputs.append((mask != 0).astype(jnp.int8))                      # int8 mask
        in_specs.append(pl.BlockSpec((1, tq, L), lambda b, q: (b, q, 0)))
    inputs += [wq_s, wkv, wfc,
               params["ln1_g"], params["ln1_b"],
               w1, params["b1"], w2, params["b2"],
               params["ln2_g"], params["ln2_b"]]
    in_specs += [const((D, n_head * d_k)),
                 const((D, n_head * (d_k + d_v))),
                 const((n_head * d_v, D)),
                 const((1, D)), const((1, D)),
                 const((D, d_inner)), const((1, d_inner)),
                 const((d_inner, D)), const((1, D)),
                 const((1, D)), const((1, D))]

    out_spec_x = pl.BlockSpec((1, tq, D), lambda b, q: (b, q, 0))
    if return_attn:
        out_specs = (out_spec_x,
                     pl.BlockSpec((1, n_head, tq, L), lambda b, q: (b, 0, q, 0)))
        out_shape = (jax.ShapeDtypeStruct((B, L, D), x.dtype),
                     jax.ShapeDtypeStruct((B, n_head, L, L), attn_dtype))
    else:
        out_specs = out_spec_x
        out_shape = jax.ShapeDtypeStruct((B, L, D), x.dtype)

    result = pl.pallas_call(
        kernel,
        grid=(B, n_qt),
        in_specs=in_specs,
        out_specs=out_specs,
        out_shape=out_shape,
        compiler_params=pltpu.CompilerParams(
            # both axes independent -> megacore can split either (v7x: 2 TCs,
            # useful even when B is 1 or odd)
            dimension_semantics=("parallel", "parallel"),
            # sized for v7x's 64 MiB physical VMEM; well within v5e/v6e's 128 MiB
            vmem_limit_bytes=48 * 1024 * 1024),
    )(*inputs)

    if return_attn:
        enc_out, attn = result
        return enc_out, attn
    return result, None


# ---------------------------------------------------------------------------
# Pure-JAX reference (mirrors the PyTorch forward, eval mode)
# ---------------------------------------------------------------------------
def encoder_layer_ref(x, params, mask=None, *, n_head, d_k, d_v, eps=1e-6):
    B, L, D = x.shape
    q = (x @ params["wq"]).reshape(B, L, n_head, d_k).transpose(0, 2, 1, 3)
    k = (x @ params["wk"]).reshape(B, L, n_head, d_k).transpose(0, 2, 1, 3)
    v = (x @ params["wv"]).reshape(B, L, n_head, d_v).transpose(0, 2, 1, 3)
    scores = jnp.einsum("bhqd,bhkd->bhqk", q / (d_k ** 0.5), k)
    if mask is not None:
        scores = jnp.where(mask[:, None] == 0, -1e9, scores)
    attn = jax.nn.softmax(scores, axis=-1)
    o = jnp.einsum("bhqk,bhkd->bhqd", attn, v)
    o = o.transpose(0, 2, 1, 3).reshape(B, L, n_head * d_v) @ params["wfc"]
    y = o + x
    mu = y.mean(-1, keepdims=True)
    var = ((y - mu) ** 2).mean(-1, keepdims=True)
    y = (y - mu) / jnp.sqrt(var + eps) * params["ln1_g"][0] + params["ln1_b"][0]
    h = jnp.maximum(y @ params["w1"] + params["b1"][0], 0.0)
    z = h @ params["w2"] + params["b2"][0] + y
    mu2 = z.mean(-1, keepdims=True)
    var2 = ((z - mu2) ** 2).mean(-1, keepdims=True)
    z = (z - mu2) / jnp.sqrt(var2 + eps) * params["ln2_g"][0] + params["ln2_b"][0]
    return z, attn


# ---------------------------------------------------------------------------
def init_params(key, d_model, d_inner, n_head, d_k, d_v):
    ks = jax.random.split(key, 10)
    s = 0.05
    return dict(
        wq=s * jax.random.normal(ks[0], (d_model, n_head * d_k), jnp.float32),
        wk=s * jax.random.normal(ks[1], (d_model, n_head * d_k), jnp.float32),
        wv=s * jax.random.normal(ks[2], (d_model, n_head * d_v), jnp.float32),
        wfc=s * jax.random.normal(ks[3], (n_head * d_v, d_model), jnp.float32),
        ln1_g=1.0 + 0.1 * jax.random.normal(ks[4], (1, d_model), jnp.float32),
        ln1_b=0.1 * jax.random.normal(ks[5], (1, d_model), jnp.float32),
        w1=s * jax.random.normal(ks[6], (d_model, d_inner), jnp.float32),
        b1=0.1 * jax.random.normal(ks[7], (1, d_inner), jnp.float32),
        w2=s * jax.random.normal(ks[8], (d_inner, d_model), jnp.float32),
        b2=0.1 * jax.random.normal(ks[9], (1, d_model), jnp.float32),
        ln2_g=jnp.ones((1, d_model), jnp.float32),
        ln2_b=jnp.zeros((1, d_model), jnp.float32),
    )


if __name__ == "__main__":
    B, L = 2, 8
    d_model, d_inner, n_head, d_k, d_v = 32, 64, 4, 8, 8

    key = jax.random.PRNGKey(0)
    kx, kp, km, kx2, km2 = jax.random.split(key, 5)
    x = jax.random.normal(kx, (B, L, d_model), jnp.float32)
    params = init_params(kp, d_model, d_inner, n_head, d_k, d_v)
    mask = (jax.random.uniform(km, (B, L, L)) > 0.3).astype(jnp.float32)
    mask = mask.at[:, :, 0].set(1.0)     # keep every row at least partly unmasked

    # 1) exact path (f32 MXU operands), slf_attn_mask=None — strict check
    out, attn = encoder_layer(x, params, mask=None, n_head=n_head, d_k=d_k,
                              d_v=d_v, compute_dtype=jnp.float32,
                              attn_dtype=jnp.float32)
    jax.block_until_ready((out, attn))
    ref_out, ref_attn = encoder_layer_ref(x, params, mask=None,
                                          n_head=n_head, d_k=d_k, d_v=d_v)
    assert out.shape == (B, L, d_model) and attn.shape == (B, n_head, L, L)
    assert jnp.allclose(out, ref_out, atol=2e-3, rtol=2e-3)
    assert jnp.allclose(attn, ref_attn, atol=2e-3, rtol=2e-3)

    # 2) exact path with a mask (int8 mask DMA path) — strict check
    out_m, attn_m = encoder_layer(x, params, mask=mask, n_head=n_head,
                                  d_k=d_k, d_v=d_v,
                                  compute_dtype=jnp.float32,
                                  attn_dtype=jnp.float32)
    ref_out_m, ref_attn_m = encoder_layer_ref(x, params, mask=mask,
                                              n_head=n_head, d_k=d_k, d_v=d_v)
    assert jnp.allclose(out_m, ref_out_m, atol=2e-3, rtol=2e-3)
    assert jnp.allclose(attn_m, ref_attn_m, atol=2e-3, rtol=2e-3)

    # 3) performance path (bf16 MXU operands, bf16 attn writeback, EUP recip)
    out_bf, attn_bf = encoder_layer(x, params, mask=mask, n_head=n_head,
                                    d_k=d_k, d_v=d_v)
    jax.block_until_ready((out_bf, attn_bf))
    assert out_bf.dtype == x.dtype and attn_bf.dtype == jnp.bfloat16
    assert float(jnp.max(jnp.abs(out_bf - ref_out_m))) < 0.25
    assert float(jnp.max(jnp.abs(attn_bf.astype(jnp.float32) - ref_attn_m))) < 0.1

    # 4) query-tiled path (second "parallel" grid axis), B=1 — strict f32 check
    B2, L2 = 1, 256
    x2 = jax.random.normal(kx2, (B2, L2, d_model), jnp.float32)
    mask2 = (jax.random.uniform(km2, (B2, L2, L2)) > 0.3).astype(jnp.float32)
    mask2 = mask2.at[:, :, 0].set(1.0)
    out2, attn2 = encoder_layer(x2, params, mask=mask2, n_head=n_head,
                                d_k=d_k, d_v=d_v, q_block=128,
                                compute_dtype=jnp.float32,
                                attn_dtype=jnp.float32)
    jax.block_until_ready((out2, attn2))
    ref_out2, ref_attn2 = encoder_layer_ref(x2, params, mask=mask2,
                                            n_head=n_head, d_k=d_k, d_v=d_v)
    assert jnp.allclose(out2, ref_out2, atol=2e-3, rtol=2e-3)
    assert jnp.allclose(attn2, ref_attn2, atol=2e-3, rtol=2e-3)

    print("KERNEL_OK")
</pallas_src>

<mosaic_0001>
module attributes {stable_mosaic.version = 11 : i64} {
  func.func @_encoder_layer_kernel(%arg0: i32, %arg1: i32, %arg2: memref<1x8x32xf32, #tpu.memory_space<vmem>>, %arg3: memref<32x32xf32, #tpu.memory_space<vmem>>, %arg4: memref<32x64xf32, #tpu.memory_space<vmem>>, %arg5: memref<32x32xf32, #tpu.memory_space<vmem>>, %arg6: memref<1x32xf32, #tpu.memory_space<vmem>>, %arg7: memref<1x32xf32, #tpu.memory_space<vmem>>, %arg8: memref<32x64xf32, #tpu.memory_space<vmem>>, %arg9: memref<1x64xf32, #tpu.memory_space<vmem>>, %arg10: memref<64x32xf32, #tpu.memory_space<vmem>>, %arg11: memref<1x32xf32, #tpu.memory_space<vmem>>, %arg12: memref<1x32xf32, #tpu.memory_space<vmem>>, %arg13: memref<1x32xf32, #tpu.memory_space<vmem>>, %arg14: memref<1x8x32xf32, #tpu.memory_space<vmem>>, %arg15: memref<1x4x8x8xf32, #tpu.memory_space<vmem>>) attributes {dimension_semantics = [#tpu.dimension_semantics<parallel>, #tpu.dimension_semantics<parallel>], iteration_bounds = array<i64: 2, 1>, scalar_prefetch = 0 : i64, scratch_operands = 0 : i64, tpu.core_type = #tpu.core_type<tc>, window_params = [{transform_indices = @transform_0, window_bounds = array<i64: 1, 8, 32>}, {pipeline_mode = #tpu.pipeline_mode<synchronous>, transform_indices = @transform_1, window_bounds = array<i64: 32, 32>}, {pipeline_mode = #tpu.pipeline_mode<synchronous>, transform_indices = @transform_2, window_bounds = array<i64: 32, 64>}, {pipeline_mode = #tpu.pipeline_mode<synchronous>, transform_indices = @transform_3, window_bounds = array<i64: 32, 32>}, {pipeline_mode = #tpu.pipeline_mode<synchronous>, transform_indices = @transform_4, window_bounds = array<i64: 1, 32>}, {pipeline_mode = #tpu.pipeline_mode<synchronous>, transform_indices = @transform_5, window_bounds = array<i64: 1, 32>}, {pipeline_mode = #tpu.pipeline_mode<synchronous>, transform_indices = @transform_6, window_bounds = array<i64: 32, 64>}, {pipeline_mode = #tpu.pipeline_mode<synchronous>, transform_indices = @transform_7, window_bounds = array<i64: 1, 64>}, {pipeline_mode = #tpu.pipeline_mode<synchronous>, transform_indices = @transform_8, window_bounds = array<i64: 64, 32>}, {pipeline_mode = #tpu.pipeline_mode<synchronous>, transform_indices = @transform_9, window_bounds = array<i64: 1, 32>}, {pipeline_mode = #tpu.pipeline_mode<synchronous>, transform_indices = @transform_10, window_bounds = array<i64: 1, 32>}, {pipeline_mode = #tpu.pipeline_mode<synchronous>, transform_indices = @transform_11, window_bounds = array<i64: 1, 32>}, {transform_indices = @transform_12, window_bounds = array<i64: 1, 8, 32>}, {transform_indices = @transform_13, window_bounds = array<i64: 1, 4, 8, 8>}]} {
    %c0 = arith.constant 0 : index
    %c0_0 = arith.constant 0 : index
    %c0_1 = arith.constant 0 : index
    %0 = vector.load %arg2[%c0, %c0_0, %c0_1] : memref<1x8x32xf32, #tpu.memory_space<vmem>>, vector<1x8x32xf32>
    %1 = vector.shape_cast %0 : vector<1x8x32xf32> to vector<8x32xf32>
    %c0_2 = arith.constant 0 : index
    %c0_3 = arith.constant 0 : index
    %c0_4 = arith.constant 0 : index
    %2 = vector.load %arg2[%c0_2, %c0_3, %c0_4] : memref<1x8x32xf32, #tpu.memory_space<vmem>>, vector<1x8x32xf32>
    %3 = vector.shape_cast %2 : vector<1x8x32xf32> to vector<8x32xf32>
    %c0_5 = arith.constant 0 : index
    %c0_6 = arith.constant 0 : index
    %4 = vector.load %arg3[%c0_5, %c0_6] : memref<32x32xf32, #tpu.memory_space<vmem>>, vector<32x32xf32>
    %cst = arith.constant dense<0.000000e+00> : vector<8x32xf32>
    %5 = tpu.matmul %1, %4, %cst {dimension_numbers = #tpu.dot_dimension_numbers<[1], [0], [0], [1], [0, 0, 1, 1], [], []>} : vector<8x32xf32>, vector<32x32xf32>, vector<8x32xf32> -> vector<8x32xf32>
    %c0_7 = arith.constant 0 : index
    %c0_8 = arith.constant 0 : index
    %6 = vector.load %arg4[%c0_7, %c0_8] : memref<32x64xf32, #tpu.memory_space<vmem>>, vector<32x64xf32>
    %cst_9 = arith.constant dense<0.000000e+00> : vector<8x64xf32>
    %7 = tpu.matmul %3, %6, %cst_9 {dimension_numbers = #tpu.dot_dimension_numbers<[1], [0], [0], [1], [0, 0, 1, 1], [], []>} : vector<8x32xf32>, vector<32x64xf32>, vector<8x64xf32> -> vector<8x64xf32>
    %8 = vector.extract_strided_slice %7 {offsets = [0, 0], sizes = [8, 32], strides = [1, 1]} : vector<8x64xf32> to vector<8x32xf32>
    %9 = vector.extract_strided_slice %7 {offsets = [0, 32], sizes = [8, 32], strides = [1, 1]} : vector<8x64xf32> to vector<8x32xf32>
    %10 = vector.extract_strided_slice %5 {offsets = [0, 0], sizes = [8, 8], strides = [1, 1]} : vector<8x32xf32> to vector<8x8xf32>
    %11 = vector.extract_strided_slice %8 {offsets = [0, 0], sizes = [8, 8], strides = [1, 1]} : vector<8x32xf32> to vector<8x8xf32>
    %12 = vector.extract_strided_slice %9 {offsets = [0, 0], sizes = [8, 8], strides = [1, 1]} : vector<8x32xf32> to vector<8x8xf32>
    %cst_10 = arith.constant dense<0.000000e+00> : vector<8x8xf32>
    %13 = tpu.matmul %10, %11, %cst_10 {dimension_numbers = #tpu.dot_dimension_numbers<[1], [1], [0], [0], [0, 0, 1, 0], [], []>} : vector<8x8xf32>, vector<8x8xf32>, vector<8x8xf32> -> vector<8x8xf32>
    %cst_11 = arith.constant dense<0xFF800000> : vector<8xf32>
    %14 = vector.multi_reduction <maximumf>, %13, %cst_11 [1] : vector<8x8xf32> to vector<8xf32>
    %15 = vector.shape_cast %14 : vector<8xf32> to vector<8x1xf32>
    %16 = vector.broadcast %15 : vector<8x1xf32> to vector<8x8xf32>
    %17 = arith.subf %13, %16 : vector<8x8xf32>
    %18 = math.exp %17 : vector<8x8xf32>
    %cst_12 = arith.constant dense<0.000000e+00> : vector<8xf32>
    %19 = vector.multi_reduction <add>, %18, %cst_12 [1] : vector<8x8xf32> to vector<8xf32>
    %20 = vector.shape_cast %19 : vector<8xf32> to vector<8x1xf32>
    %21 = tpu.reciprocal %20 : vector<8x1xf32> -> vector<8x1xf32>
    %22 = vector.broadcast %21 : vector<8x1xf32> to vector<8x8xf32>
    %23 = arith.mulf %18, %22 : vector<8x8xf32>
    %c0_13 = arith.constant 0 : index
    %c0_14 = arith.constant 0 : index
    %c0_15 = arith.constant 0 : index
    %c0_16 = arith.constant 0 : index
    %24 = vector.load %arg15[%c0_13, %c0_14, %c0_15, %c0_16] : memref<1x4x8x8xf32, #tpu.memory_space<vmem>>, vector<1x1x8x8xf32>
    %25 = vector.shape_cast %24 : vector<1x1x8x8xf32> to vector<8x8xf32>
    %26 = vector.shape_cast %23 : vector<8x8xf32> to vector<1x1x8x8xf32>
    tpu.vector_store %arg15[%c0_13, %c0_14, %c0_15, %c0_16], %26 {strides = array<i32>} : memref<1x4x8x8xf32, #tpu.memory_space<vmem>>, vector<1x1x8x8xf32>,
    %cst_17 = arith.constant dense<0.000000e+00> : vector<8x8xf32>
    %27 = tpu.matmul %23, %12, %cst_17 {dimension_numbers = #tpu.dot_dimension_numbers<[1], [0], [0], [1], [0, 0, 1, 1], [], []>} : vector<8x8xf32>, vector<8x8xf32>, vector<8x8xf32> -> vector<8x8xf32>
    %28 = vector.extract_strided_slice %5 {offsets = [0, 8], sizes = [8, 8], strides = [1, 1]} : vector<8x32xf32> to vector<8x8xf32>
    %29 = vector.extract_strided_slice %8 {offsets = [0, 8], sizes = [8, 8], strides = [1, 1]} : vector<8x32xf32> to vector<8x8xf32>
    %30 = vector.extract_strided_slice %9 {offsets = [0, 8], sizes = [8, 8], strides = [1, 1]} : vector<8x32xf32> to vector<8x8xf32>
    %cst_18 = arith.constant dense<0.000000e+00> : vector<8x8xf32>
    %31 = tpu.matmul %28, %29, %cst_18 {dimension_numbers = #tpu.dot_dimension_numbers<[1], [1], [0], [0], [0, 0, 1, 0], [], []>} : vector<8x8xf32>, vector<8x8xf32>, vector<8x8xf32> -> vector<8x8xf32>
    %cst_19 = arith.constant dense<0xFF800000> : vector<8xf32>
    %32 = vector.multi_reduction <maximumf>, %31, %cst_19 [1] : vector<8x8xf32> to vector<8xf32>
    %33 = vector.shape_cast %32 : vector<8xf32> to vector<8x1xf32>
    %34 = vector.broadcast %33 : vector<8x1xf32> to vector<8x8xf32>
    %35 = arith.subf %31, %34 : vector<8x8xf32>
    %36 = math.exp %35 : vector<8x8xf32>
    %cst_20 = arith.constant dense<0.000000e+00> : vector<8xf32>
    %37 = vector.multi_reduction <add>, %36, %cst_20 [1] : vector<8x8xf32> to vector<8xf32>
    %38 = vector.shape_cast %37 : vector<8xf32> to vector<8x1xf32>
    %39 = tpu.reciprocal %38 : vector<8x1xf32> -> vector<8x1xf32>
    %40 = vector.broadcast %39 : vector<8x1xf32> to vector<8x8xf32>
    %41 = arith.mulf %36, %40 : vector<8x8xf32>
    %c0_21 = arith.constant 0 : index
    %c1 = arith.constant 1 : index
    %c0_22 = arith.constant 0 : index
    %c0_23 = arith.constant 0 : index
    %42 = vector.load %arg15[%c0_21, %c1, %c0_22, %c0_23] : memref<1x4x8x8xf32, #tpu.memory_space<vmem>>, vector<1x1x8x8xf32>
    %43 = vector.shape_cast %42 : vector<1x1x8x8xf32> to vector<8x8xf32>
    %44 = vector.shape_cast %41 : vector<8x8xf32> to vector<1x1x8x8xf32>
    tpu.vector_store %arg15[%c0_21, %c1, %c0_22, %c0_23], %44 {strides = array<i32>} : memref<1x4x8x8xf32, #tpu.memory_space<vmem>>, vector<1x1x8x8xf32>,
    %cst_24 = arith.constant dense<0.000000e+00> : vector<8x8xf32>
    %45 = tpu.matmul %41, %30, %cst_24 {dimension_numbers = #tpu.dot_dimension_numbers<[1], [0], [0], [1], [0, 0, 1, 1], [], []>} : vector<8x8xf32>, vector<8x8xf32>, vector<8x8xf32> -> vector<8x8xf32>
    %46 = vector.extract_strided_slice %5 {offsets = [0, 16], sizes = [8, 8], strides = [1, 1]} : vector<8x32xf32> to vector<8x8xf32>
    %47 = vector.extract_strided_slice %8 {offsets = [0, 16], sizes = [8, 8], strides = [1, 1]} : vector<8x32xf32> to vector<8x8xf32>
    %48 = vector.extract_strided_slice %9 {offsets = [0, 16], sizes = [8, 8], strides = [1, 1]} : vector<8x32xf32> to vector<8x8xf32>
    %cst_25 = arith.constant dense<0.000000e+00> : vector<8x8xf32>
    %49 = tpu.matmul %46, %47, %cst_25 {dimension_numbers = #tpu.dot_dimension_numbers<[1], [1], [0], [0], [0, 0, 1, 0], [], []>} : vector<8x8xf32>, vector<8x8xf32>, vector<8x8xf32> -> vector<8x8xf32>
    %cst_26 = arith.constant dense<0xFF800000> : vector<8xf32>
    %50 = vector.multi_reduction <maximumf>, %49, %cst_26 [1] : vector<8x8xf32> to vector<8xf32>
    %51 = vector.shape_cast %50 : vector<8xf32> to vector<8x1xf32>
    %52 = vector.broadcast %51 : vector<8x1xf32> to vector<8x8xf32>
    %53 = arith.subf %49, %52 : vector<8x8xf32>
    %54 = math.exp %53 : vector<8x8xf32>
    %cst_27 = arith.constant dense<0.000000e+00> : vector<8xf32>
    %55 = vector.multi_reduction <add>, %54, %cst_27 [1] : vector<8x8xf32> to vector<8xf32>
    %56 = vector.shape_cast %55 : vector<8xf32> to vector<8x1xf32>
    %57 = tpu.reciprocal %56 : vector<8x1xf32> -> vector<8x1xf32>
    %58 = vector.broadcast %57 : vector<8x1xf32> to vector<8x8xf32>
    %59 = arith.mulf %54, %58 : vector<8x8xf32>
    %c0_28 = arith.constant 0 : index
    %c2 = arith.constant 2 : index
    %c0_29 = arith.constant 0 : index
    %c0_30 = arith.constant 0 : index
    %60 = vector.load %arg15[%c0_28, %c2, %c0_29, %c0_30] : memref<1x4x8x8xf32, #tpu.memory_space<vmem>>, vector<1x1x8x8xf32>
    %61 = vector.shape_cast %60 : vector<1x1x8x8xf32> to vector<8x8xf32>
    %62 = vector.shape_cast %59 : vector<8x8xf32> to vector<1x1x8x8xf32>
    tpu.vector_store %arg15[%c0_28, %c2, %c0_29, %c0_30], %62 {strides = array<i32>} : memref<1x4x8x8xf32, #tpu.memory_space<vmem>>, vector<1x1x8x8xf32>,
    %cst_31 = arith.constant dense<0.000000e+00> : vector<8x8xf32>
    %63 = tpu.matmul %59, %48, %cst_31 {dimension_numbers = #tpu.dot_dimension_numbers<[1], [0], [0], [1], [0, 0, 1, 1], [], []>} : vector<8x8xf32>, vector<8x8xf32>, vector<8x8xf32> -> vector<8x8xf32>
    %64 = vector.extract_strided_slice %5 {offsets = [0, 24], sizes = [8, 8], strides = [1, 1]} : vector<8x32xf32> to vector<8x8xf32>
    %65 = vector.extract_strided_slice %8 {offsets = [0, 24], sizes = [8, 8], strides = [1, 1]} : vector<8x32xf32> to vector<8x8xf32>
    %66 = vector.extract_strided_slice %9 {offsets = [0, 24], sizes = [8, 8], strides = [1, 1]} : vector<8x32xf32> to vector<8x8xf32>
    %cst_32 = arith.constant dense<0.000000e+00> : vector<8x8xf32>
    %67 = tpu.matmul %64, %65, %cst_32 {dimension_numbers = #tpu.dot_dimension_numbers<[1], [1], [0], [0], [0, 0, 1, 0], [], []>} : vector<8x8xf32>, vector<8x8xf32>, vector<8x8xf32> -> vector<8x8xf32>
    %cst_33 = arith.constant dense<0xFF800000> : vector<8xf32>
    %68 = vector.multi_reduction <maximumf>, %67, %cst_33 [1] : vector<8x8xf32> to vector<8xf32>
    %69 = vector.shape_cast %68 : vector<8xf32> to vector<8x1xf32>
    %70 = vector.broadcast %69 : vector<8x1xf32> to vector<8x8xf32>
    %71 = arith.subf %67, %70 : vector<8x8xf32>
    %72 = math.exp %71 : vector<8x8xf32>
    %cst_34 = arith.constant dense<0.000000e+00> : vector<8xf32>
    %73 = vector.multi_reduction <add>, %72, %cst_34 [1] : vector<8x8xf32> to vector<8xf32>
    %74 = vector.shape_cast %73 : vector<8xf32> to vector<8x1xf32>
    %75 = tpu.reciprocal %74 : vector<8x1xf32> -> vector<8x1xf32>
    %76 = vector.broadcast %75 : vector<8x1xf32> to vector<8x8xf32>
    %77 = arith.mulf %72, %76 : vector<8x8xf32>
    %c0_35 = arith.constant 0 : index
    %c3 = arith.constant 3 : index
    %c0_36 = arith.constant 0 : index
    %c0_37 = arith.constant 0 : index
    %78 = vector.load %arg15[%c0_35, %c3, %c0_36, %c0_37] : memref<1x4x8x8xf32, #tpu.memory_space<vmem>>, vector<1x1x8x8xf32>
    %79 = vector.shape_cast %78 : vector<1x1x8x8xf32> to vector<8x8xf32>
    %80 = vector.shape_cast %77 : vector<8x8xf32> to vector<1x1x8x8xf32>
    tpu.vector_store %arg15[%c0_35, %c3, %c0_36, %c0_37], %80 {strides = array<i32>} : memref<1x4x8x8xf32, #tpu.memory_space<vmem>>, vector<1x1x8x8xf32>,
    %cst_38 = arith.constant dense<0.000000e+00> : vector<8x8xf32>
    %81 = tpu.matmul %77, %66, %cst_38 {dimension_numbers = #tpu.dot_dimension_numbers<[1], [0], [0], [1], [0, 0, 1, 1], [], []>} : vector<8x8xf32>, vector<8x8xf32>, vector<8x8xf32> -> vector<8x8xf32>
    %82 = tpu.concatenate %27, %45, %63, %81 in 1 : vector<8x8xf32>, vector<8x8xf32>, vector<8x8xf32>, vector<8x8xf32> -> vector<8x32xf32>
    %c0_39 = arith.constant 0 : index
    %c0_40 = arith.constant 0 : index
    %83 = vector.load %arg5[%c0_39, %c0_40] : memref<32x32xf32, #tpu.memory_space<vmem>>, vector<32x32xf32>
    %cst_41 = arith.constant dense<0.000000e+00> : vector<8x32xf32>
    %84 = tpu.matmul %82, %83, %cst_41 {dimension_numbers = #tpu.dot_dimension_numbers<[1], [0], [0], [1], [0, 0, 1, 1], [], []>} : vector<8x32xf32>, vector<32x32xf32>, vector<8x32xf32> -> vector<8x32xf32>
    %85 = arith.addf %84, %1 : vector<8x32xf32>
    %cst_42 = arith.constant dense<0.000000e+00> : vector<8xf32>
    %86 = vector.multi_reduction <add>, %85, %cst_42 [1] : vector<8x32xf32> to vector<8xf32>
    %87 = vector.shape_cast %86 : vector<8xf32> to vector<8x1xf32>
    %cst_43 = arith.constant 3.200000e+01 : f32
    %88 = vector.broadcast %cst_43 : f32 to vector<8x1xf32>
    %89 = arith.divf %87, %88 : vector<8x1xf32>
    %90 = vector.broadcast %89 : vector<8x1xf32> to vector<8x32xf32>
    %91 = arith.subf %85, %90 : vector<8x32xf32>
    %92 = arith.mulf %91, %91 : vector<8x32xf32>
    %cst_44 = arith.constant dense<0.000000e+00> : vector<8xf32>
    %93 = vector.multi_reduction <add>, %92, %cst_44 [1] : vector<8x32xf32> to vector<8xf32>
    %94 = vector.shape_cast %93 : vector<8xf32> to vector<8x1xf32>
    %cst_45 = arith.constant 3.200000e+01 : f32
    %95 = vector.broadcast %cst_45 : f32 to vector<8x1xf32>
    %96 = arith.divf %94, %95 : vector<8x1xf32>
    %97 = vector.broadcast %89 : vector<8x1xf32> to vector<8x32xf32>
    %98 = arith.subf %85, %97 : vector<8x32xf32>
    %cst_46 = arith.constant 9.99999997E-7 : f32
    %99 = vector.broadcast %cst_46 : f32 to vector<8x1xf32>
    %100 = arith.addf %96, %99 : vector<8x1xf32>
    %101 = math.rsqrt %100 : vector<8x1xf32>
    %102 = vector.broadcast %101 : vector<8x1xf32> to vector<8x32xf32>
    %103 = arith.mulf %98, %102 : vector<8x32xf32>
    %c0_47 = arith.constant 0 : index
    %c0_48 = arith.constant 0 : index
    %104 = vector.load %arg6[%c0_47, %c0_48] : memref<1x32xf32, #tpu.memory_space<vmem>>, vector<1x32xf32>
    %105 = vector.broadcast %104 : vector<1x32xf32> to vector<8x32xf32>
    %106 = arith.mulf %103, %105 : vector<8x32xf32>
    %c0_49 = arith.constant 0 : index
    %c0_50 = arith.constant 0 : index
    %107 = vector.load %arg7[%c0_49, %c0_50] : memref<1x32xf32, #tpu.memory_space<vmem>>, vector<1x32xf32>
    %108 = vector.broadcast %107 : vector<1x32xf32> to vector<8x32xf32>
    %109 = arith.addf %106, %108 : vector<8x32xf32>
    %c0_51 = arith.constant 0 : index
    %c0_52 = arith.constant 0 : index
    %110 = vector.load %arg8[%c0_51, %c0_52] : memref<32x64xf32, #tpu.memory_space<vmem>>, vector<32x64xf32>
    %cst_53 = arith.constant dense<0.000000e+00> : vector<8x64xf32>
    %111 = tpu.matmul %109, %110, %cst_53 {dimension_numbers = #tpu.dot_dimension_numbers<[1], [0], [0], [1], [0, 0, 1, 1], [], []>} : vector<8x32xf32>, vector<32x64xf32>, vector<8x64xf32> -> vector<8x64xf32>
    %c0_54 = arith.constant 0 : index
    %c0_55 = arith.constant 0 : index
    %112 = vector.load %arg9[%c0_54, %c0_55] : memref<1x64xf32, #tpu.memory_space<vmem>>, vector<1x64xf32>
    %113 = vector.broadcast %112 : vector<1x64xf32> to vector<8x64xf32>
    %114 = arith.addf %111, %113 : vector<8x64xf32>
    %cst_56 = arith.constant 0.000000e+00 : f32
    %115 = vector.broadcast %cst_56 : f32 to vector<8x64xf32>
    %116 = arith.maximumf %114, %115 : vector<8x64xf32>
    %c0_57 = arith.constant 0 : index
    %c0_58 = arith.constant 0 : index
    %117 = vector.load %arg10[%c0_57, %c0_58] : memref<64x32xf32, #tpu.memory_space<vmem>>, vector<64x32xf32>
    %cst_59 = arith.constant dense<0.000000e+00> : vector<8x32xf32>
    %118 = tpu.matmul %116, %117, %cst_59 {dimension_numbers = #tpu.dot_dimension_numbers<[1], [0], [0], [1], [0, 0, 1, 1], [], []>} : vector<8x64xf32>, vector<64x32xf32>, vector<8x32xf32> -> vector<8x32xf32>
    %c0_60 = arith.constant 0 : index
    %c0_61 = arith.constant 0 : index
    %119 = vector.load %arg11[%c0_60, %c0_61] : memref<1x32xf32, #tpu.memory_space<vmem>>, vector<1x32xf32>
    %120 = vector.broadcast %119 : vector<1x32xf32> to vector<8x32xf32>
    %121 = arith.addf %118, %120 : vector<8x32xf32>
    %122 = arith.addf %121, %109 : vector<8x32xf32>
    %cst_62 = arith.constant dense<0.000000e+00> : vector<8xf32>
    %123 = vector.multi_reduction <add>, %122, %cst_62 [1] : vector<8x32xf32> to vector<8xf32>
    %124 = vector.shape_cast %123 : vector<8xf32> to vector<8x1xf32>
    %cst_63 = arith.constant 3.200000e+01 : f32
    %125 = vector.broadcast %cst_63 : f32 to vector<8x1xf32>
    %126 = arith.divf %124, %125 : vector<8x1xf32>
    %127 = vector.broadcast %126 : vector<8x1xf32> to vector<8x32xf32>
    %128 = arith.subf %122, %127 : vector<8x32xf32>
    %129 = arith.mulf %128, %128 : vector<8x32xf32>
    %cst_64 = arith.constant dense<0.000000e+00> : vector<8xf32>
    %130 = vector.multi_reduction <add>, %129, %cst_64 [1] : vector<8x32xf32> to vector<8xf32>
    %131 = vector.shape_cast %130 : vector<8xf32> to vector<8x1xf32>
    %cst_65 = arith.constant 3.200000e+01 : f32
    %132 = vector.broadcast %cst_65 : f32 to vector<8x1xf32>
    %133 = arith.divf %131, %132 : vector<8x1xf32>
    %134 = vector.broadcast %126 : vector<8x1xf32> to vector<8x32xf32>
    %135 = arith.subf %122, %134 : vector<8x32xf32>
    %cst_66 = arith.constant 9.99999997E-7 : f32
    %136 = vector.broadcast %cst_66 : f32 to vector<8x1xf32>
    %137 = arith.addf %133, %136 : vector<8x1xf32>
    %138 = math.rsqrt %137 : vector<8x1xf32>
    %139 = vector.broadcast %138 : vector<8x1xf32> to vector<8x32xf32>
    %140 = arith.mulf %135, %139 : vector<8x32xf32>
    %c0_67 = arith.constant 0 : index
    %c0_68 = arith.constant 0 : index
    %141 = vector.load %arg12[%c0_67, %c0_68] : memref<1x32xf32, #tpu.memory_space<vmem>>, vector<1x32xf32>
    %142 = vector.broadcast %141 : vector<1x32xf32> to vector<8x32xf32>
    %143 = arith.mulf %140, %142 : vector<8x32xf32>
    %c0_69 = arith.constant 0 : index
    %c0_70 = arith.constant 0 : index
    %144 = vector.load %arg13[%c0_69, %c0_70] : memref<1x32xf32, #tpu.memory_space<vmem>>, vector<1x32xf32>
    %145 = vector.broadcast %144 : vector<1x32xf32> to vector<8x32xf32>
    %146 = arith.addf %143, %145 : vector<8x32xf32>
    %c0_71 = arith.constant 0 : index
    %c0_72 = arith.constant 0 : index
    %c0_73 = arith.constant 0 : index
    %147 = vector.load %arg14[%c0_71, %c0_72, %c0_73] : memref<1x8x32xf32, #tpu.memory_space<vmem>>, vector<1x8x32xf32>
    %148 = vector.shape_cast %147 : vector<1x8x32xf32> to vector<8x32xf32>
    %149 = vector.shape_cast %146 : vector<8x32xf32> to vector<1x8x32xf32>
    tpu.vector_store %arg14[%c0_71, %c0_72, %c0_73], %149 {strides = array<i32>} : memref<1x8x32xf32, #tpu.memory_space<vmem>>, vector<1x8x32xf32>,
    return
  }
  func.func @transform_0(%arg0: i32, %arg1: i32) -> (i32, i32, i32) {
    %c0_i32 = arith.constant 0 : i32
    %c0_i32_0 = arith.constant 0 : i32
    return %arg0, %arg1, %c0_i32 : i32, i32, i32
  }
  func.func @transform_1(%arg0: i32, %arg1: i32) -> (i32, i32) {
    %c0_i32 = arith.constant 0 : i32
    %c0_i32_0 = arith.constant 0 : i32
    %c0_i32_1 = arith.constant 0 : i32
    return %c0_i32, %c0_i32_0 : i32, i32
  }
  func.func @transform_2(%arg0: i32, %arg1: i32) -> (i32, i32) {
    %c0_i32 = arith.constant 0 : i32
    %c0_i32_0 = arith.constant 0 : i32
    %c0_i32_1 = arith.constant 0 : i32
    return %c0_i32, %c0_i32_0 : i32, i32
  }
  func.func @transform_3(%arg0: i32, %arg1: i32) -> (i32, i32) {
    %c0_i32 = arith.constant 0 : i32
    %c0_i32_0 = arith.constant 0 : i32
    %c0_i32_1 = arith.constant 0 : i32
    return %c0_i32, %c0_i32_0 : i32, i32
  }
  func.func @transform_4(%arg0: i32, %arg1: i32) -> (i32, i32) {
    %c0_i32 = arith.constant 0 : i32
    %c0_i32_0 = arith.constant 0 : i32
    %c0_i32_1 = arith.constant 0 : i32
    return %c0_i32, %c0_i32_0 : i32, i32
  }
  func.func @transform_5(%arg0: i32, %arg1: i32) -> (i32, i32) {
    %c0_i32 = arith.constant 0 : i32
    %c0_i32_0 = arith.constant 0 : i32
    %c0_i32_1 = arith.constant 0 : i32
    return %c0_i32, %c0_i32_0 : i32, i32
  }
  func.func @transform_6(%arg0: i32, %arg1: i32) -> (i32, i32) {
    %c0_i32 = arith.constant 0 : i32
    %c0_i32_0 = arith.constant 0 : i32
    %c0_i32_1 = arith.constant 0 : i32
    return %c0_i32, %c0_i32_0 : i32, i32
  }
  func.func @transform_7(%arg0: i32, %arg1: i32) -> (i32, i32) {
    %c0_i32 = arith.constant 0 : i32
    %c0_i32_0 = arith.constant 0 : i32
    %c0_i32_1 = arith.constant 0 : i32
    return %c0_i32, %c0_i32_0 : i32, i32
  }
  func.func @transform_8(%arg0: i32, %arg1: i32) -> (i32, i32) {
    %c0_i32 = arith.constant 0 : i32
    %c0_i32_0 = arith.constant 0 : i32
    %c0_i32_1 = arith.constant 0 : i32
    return %c0_i32, %c0_i32_0 : i32, i32
  }
  func.func @transform_9(%arg0: i32, %arg1: i32) -> (i32, i32) {
    %c0_i32 = arith.constant 0 : i32
    %c0_i32_0 = arith.constant 0 : i32
    %c0_i32_1 = arith.constant 0 : i32
    return %c0_i32, %c0_i32_0 : i32, i32
  }
  func.func @transform_10(%arg0: i32, %arg1: i32) -> (i32, i32) {
    %c0_i32 = arith.constant 0 : i32
    %c0_i32_0 = arith.constant 0 : i32
    %c0_i32_1 = arith.constant 0 : i32
    return %c0_i32, %c0_i32_0 : i32, i32
  }
  func.func @transform_11(%arg0: i32, %arg1: i32) -> (i32, i32) {
    %c0_i32 = arith.constant 0 : i32
    %c0_i32_0 = arith.constant 0 : i32
    %c0_i32_1 = arith.constant 0 : i32
    return %c0_i32, %c0_i32_0 : i32, i32
  }
  func.func @transform_12(%arg0: i32, %arg1: i32) -> (i32, i32, i32) {
    %c0_i32 = arith.constant 0 : i32
    %c0_i32_0 = arith.constant 0 : i32
    return %arg0, %arg1, %c0_i32 : i32, i32, i32
  }
  func.func @transform_13(%arg0: i32, %arg1: i32) -> (i32, i32, i32, i32) {
    %c0_i32 = arith.constant 0 : i32
    %c0_i32_0 = arith.constant 0 : i32
    %c0_i32_1 = arith.constant 0 : i32
    return %arg0, %c0_i32, %arg1, %c0_i32_0 : i32, i32, i32, i32
  }
}

</mosaic_0001>

<bundles_post_ra>
// kernel: tpu_custom_call.1
= control target key start
LH: loop header
LB: loop body
LE: loop exit
PB: predicated region body
PF: predicated region fallthrough
CT: control target
= control target key end

     0   :  { %s2773_s0 = inlined_call_operand.hbm [shape: f32[2,8,32], index: 0, kind: input, shape index: {}]   ;;  %s2774_s1 = inlined_call_operand.vmem [shape: f32[32,32], index: 1, kind: input, shape index: {}]   ;;  %s2775_s2 = inlined_call_operand.vmem [shape: f32[32,64], index: 2, kind: input, shape index: {}]   ;;  %s2776_s3 = inlined_call_operand.vmem [shape: f32[32,32], index: 3, kind: input, shape index: {}]   ;;  %s2777_s4 = inlined_call_operand.vmem [shape: f32[1,32], index: 4, kind: input, shape index: {}]   ;;  %s2778_s5 = inlined_call_operand.vmem [shape: f32[1,32], index: 5, kind: input, shape index: {}]   ;;  %s2779_s6 = inlined_call_operand.hbm [shape: f32[32,64], index: 6, kind: input, shape index: {}]   ;;  %s2780_s7 = inlined_call_operand.vmem [shape: f32[1,64], index: 7, kind: input, shape index: {}]   ;;  %s2781_s8 = inlined_call_operand.vmem [shape: f32[64,32], index: 8, kind: input, shape index: {}]   ;;  %s2782_s9 = inlined_call_operand.vmem [shape: f32[1,32], index: 9, kind: input, shape index: {}]   ;;  %s2783_s10 = inlined_call_operand.vmem [shape: f32[1,32], index: 10, kind: input, shape index: {}]   ;;  %s2784_s11 = inlined_call_operand.vmem [shape: f32[1,32], index: 11, kind: input, shape index: {}]   ;;  %s2785_s12 = inlined_call_operand.hbm [shape: f32[2,8,32], index: 12, kind: output, shape index: {0}]   ;;  %s2786_s13 = inlined_call_operand.hbm [shape: f32[2,4,8,8], index: 13, kind: output, shape index: {1}]  }
   0x1   :  { %2794 = sst [smem:[#allocation18_spill]] %s2779_s6 }
   0x2   :  { %2795 = sst [smem:[#allocation19_spill]] %s2782_s9 }
   0x3   :  { %2796 = sst [smem:[#allocation20_spill]] %s2783_s10 }
   0x4   :  { %2797 = sst [smem:[#allocation21_spill]] %s2784_s11 }
   0x5   :  { %2798 = sst [smem:[#allocation22_spill]] %s2785_s12 }
   0x6   :  { %2799 = sst [smem:[#allocation23_spill]] %s2786_s13 }
   0x7   :  { %19 = vsyncpa [#allocation3], 0 }
   0x8   :  { %21 = vsyncpa [#allocation3 + $0x1], 0 }
   0x9   :  { %22 = vsyncpa [#allocation6], 0 }
   0xa   :  { %23 = vsyncpa [#allocation4], 0 }
   0xb   :  { %25 = vsyncpa [#allocation4 + $0x1], 0 }
   0xc   :  { %26 = vsyncpa [#allocation9], 0 }
   0xd   :  { %28 = vsyncpa [#allocation9 + $0x1], 0  ;;  %s2376_s25 = smov 0   ;;  %s2378_s26 = smov 0  }
   0xe   :  { %s2380_s27 = smov 0   ;;  %s2382_s28 = smov 0  }
   0xf   :  { %s2384_s29 = smov 0   ;;  %s2386_s30 = smov 0  }
  0x10 LB: > { %2800 = sst [smem:[#allocation14_spill]] %s2265_s25  ;;  %s1810_s14 = sadd.s32 4294967295, %s2285_s30   ;;  %s2285_s30 = sphi %s2386_s30, %s34_s30   ;;  %s2281_s29 = sphi %s2384_s29, %s2825_s29   ;;  %s2277_s28 = sphi %s2382_s28, %s2824_s28   ;;  %s2273_s27 = sphi %s2380_s27, %s2828_s27   ;;  %s2269_s26 = sphi %s2378_s26, %s2827_s26   ;;  %s2265_s25 = sphi %s2376_s25, %s2826_s25  }
  0x11   : > { %2801 = sst [smem:[#allocation15_spill]] %s2281_s29  ;;  %s1811_s15 = sadd.s32 4294967294, %s2285_s30  }
  0x12   : > { %p68_p0 = scmp.ne.s32.totalorder %s2269_s26, %s2265_s25  ;;  %p2410_p1 = scmp.eq.s32.totalorder %s1810_s14, 0 }
  0x13   : > { %p2414_p2 = scmp.eq.s32.totalorder %s1810_s14, 1  ;;  %p331_p3 = scmp.eq.s32.totalorder %s1811_s15, 1 }
  0x14   : > { %p2420_p4 = por %p2410_p1, %p68_p0  ;;  %p1812_p5 = scmp.ge.s32.totalorder %s2285_s30, 1 }
  0x15   : > { %p2425_p6 = por %p331_p3, %p68_p0  ;;  %p366_p7 = scmp.lt.s32.totalorder %s2285_s30, 3 }
  0x16   : > { %s2804_s18 = scalar_select %p2420_p4, 1, 0 }
  0x17   : > { %s2805_s19 = scalar_select %p2425_p6, 1, 0 }
  0x18   : > { %p2430_p8 = pnand %p1812_p5, %p366_p7  ;;  %s2287_s21 = smov [#allocation5]  }
  0x19   : > { %2806 = sst [smem:[#allocation16_spill]] %s2805_s19  ;;  %s393_s22 = sshll.u32 %s2287_s21, 4  ;;  %s394_s22 = int_to_ptr.vmem [resolvable:$true] %s393_s22 }
  0x1a   : > { %p2014_p9 = pneg %p2430_p8  ;;  %s46_s24 = sadd.s32 1, %s2281_s29 }
  0x1b   : > { %s2128_s14 = scalar_lea.vmem %s394_s22, 512  ;;  %p2136_p5 = scmp.lt.s32.totalorder %s394_s22, %s394_s22 }
  0x1c   : > { %p2439_p11 = pnand %p2014_p9, %p2410_p1  ;;  %p2129_p13 = scmp.ne.s32.totalorder %s394_s22, %s2128_s14 }
  0x1d   : > { %p2137_p7 = scmp.lt.s32.totalorder %s2128_s14, %s2128_s14 }
  0x1e   : > { %p2119_p12 = pneg %p2439_p11 }
  0x1f   : > { %p2138_p6 = por %p2137_p7, %p2136_p5 }
  0x20   : > { %p2131_p0 = pnand %p2129_p13, %p2119_p12 }
  0x22   : > { %p2132_p3 = pneg %p2131_p0 }
  0x24   : > { %p2139_p4 = pnand %p2138_p6, %p2132_p3 }
  0x26   : > { %2142 = shalt.err (!%p2139_p4)
}
  0x27   : > { %s2288_s15 = smov 128   ;;  %s2289_s21 = smov 8  }
  0x28   : > { %s2809_s6 = sld [smem:[#allocation18_spill]]  ;;  %p48_p6 = scmp.ge.s32.totalorder %s46_s24, 2 }
  0x29   : > { %s55_s14 = sadd.s32 1, %s2273_s27  ;;  %p62_p4 = scmp.ne.s32.totalorder %s2273_s27, %s2269_s26 }
  0x2a   : > { %p63_p9 = scmp.eq.s32.totalorder %s2285_s30, 0  ;;  %s2830_s24 = smov (%p48_p6, %s46_s24), 0 }
  0x2b   : > { %2810 = sst [smem:[#allocation17_spill]] %s2830_s24  ;;  %p2463_p13 = por %p2414_p2, %p62_p4 }
  0x2c   : > { %p2457_p12 = por %p63_p9, %p62_p4  ;;  %s50_s23 = ssub.s32 %s2281_s29, %s2830_s24 }
  0x2d   : > { %p2030_p0 = scmp.lt.s32.totalorder %s2285_s30, 2  ;;  %s422_s25 = sand.u32 1, %s2273_s27  }
  0x2e   : > { %2017 = dma.hbm_to_vmem [thread:$0]  (!%p2439_p11), %s2809_s6, 512, %s394_s22, [#allocation6], %s2288_s15, %s2288_s15, %s2289_s21  }
  0x2f   : > { %p53_p11 = scmp.eq.s32.totalorder %s50_s23, 0  ;;  %s1815_s19 = sshll.u32 %s422_s25, 3 }
  0x30   : > { %s1816_s15 = sshll.u32 %s2281_s29, 7  ;;  %s426_s13 = scalar_lea.vmem [#allocation2], %s1815_s19 }
  0x31   : > { %s2472_s22 = scalar_select %p53_p11, %s2273_s27, %s55_s14  }
  0x32   : > { %s432_s10 = scalar_lea.hbm %s2773_s0, %s1816_s15  ;;  %s434_s9 = sshll.u32 %s426_s13, 4  ;;  %s435_s9 = int_to_ptr.vmem [resolvable:$true] %s434_s9 }
  0x33   : > { %p2480_p2 = pnand %p2030_p0, %p2457_p12  ;;  %s423_s24 = scalar_lea.sflag [#allocation3], %s422_s25 }
  0x34   : > { %s2156_s23 = scalar_lea.vmem %s435_s9, 128  ;;  %s2290_s14 = smov [#allocation2]  }
  0x35   : > { %p2145_p3 = pneg %p2480_p2  ;;  %p2157_p5 = scmp.ne.s32.totalorder %s435_s9, %s2156_s23 }
  0x36   : > { %s2161_s29 = sshll.u32 %s2290_s14, 4  ;;  %s2162_s29 = int_to_ptr.vmem [resolvable:$false] %s2161_s29 }
  0x37   : > { %p2159_p7 = pnand %p2157_p5, %p2145_p3  ;;  %s2163_s6 = scalar_lea.vmem %s2162_s29, 256 }
  0x38   : > { %p2164_p4 = scmp.lt.s32.totalorder %s435_s9, %s2162_s29  ;;  %p2165_p9 = scmp.lt.s32.totalorder %s2163_s6, %s2156_s23 }
  0x39   : > { %p2160_p6 = pneg %p2159_p7 }
  0x3a   : > { %p2166_p11 = por %p2165_p9, %p2164_p4 }
  0x3c   : > { %p2167_p10 = pnand %p2166_p11, %p2160_p6 }
  0x3e   : > { %2170 = shalt.err (!%p2167_p10)
}
  0x3f   : > { %2021 = dma.hbm_to_vmem [thread:$0]  (!%p2480_p2), %s432_s10, 128, %s435_s9, %s423_s24  }
  0x40   : > { %443 = sbr.rel (%p2430_p8) target bundleno = 2443 (0x98b), region = 68  ;;  %s2491_s12 = sand.u32 (!%p2430_p8), 1, %s2269_s26  }
  0x41   : > { %s1818_s13 = sshll.u32 (!%p2430_p8), %s2491_s12, 3  ;;  %s446_s25 = scalar_lea.sflag (!%p2430_p8), [#allocation3], %s2491_s12 }
  0x42   : > { %s449_s29 = scalar_lea.vmem (!%p2430_p8), [#allocation2], %s1818_s13  ;;  %p2814_p12 = scmp.ne.s32.totalorder (!%p2430_p8), %s2804_s18, 0 }
  0x45   : > { %2248 = dma.done.wait (%p2814_p12), %s446_s25, 128  }
  0x46   : > { %2250 = vsyncadd (%p2814_p12), %s446_s25, 4294967168 }
  0x47   : > { %2252 = dma.done.wait (%p2410_p1), [#allocation6], 512  }
  0x48   : > { %2254 = vsyncadd (%p2410_p1), [#allocation6], 4294966784  ;;  %v2291_v0 = vmov 0.0   ;;  %vm2292_vm0 = vmmov 0   ;;  %v505_v1 = vld [vmem:[%s2774_s1 + $0x18] sm:$0xff]  ;;  %v504_v2 = vld [vmem:[%s2774_s1 + $0x10] sm:$0xff] }
  0x49   : > { %1901 = vmatprep.subr.mxu1 %v2291_v0  ;;  %1909 = vmatprep.mubr.msk.f32.mxu1 %vm2292_vm0, %v2291_v0  ;;  %v503_v3 = vld [vmem:[%s2774_s1 + $0x8] sm:$0xff]  ;;  %v502_v4 = vld [vmem:[%s2774_s1] sm:$0xff]  ;;  %vm506_vm1 = vcmask 261120   ;;  %v583_v6 = vld [vmem:[%s2775_s2 + $0x18] sm:$0xff]  ;;  %vm654_vm2 = vcmask 64512   ;;  %s2293_s10 = smov 112  }
  0x4a   : > { %1923 = vmatprep.subr.mxu0 %v2291_v0  ;;  %1925 = vmatprep.mubr.msk.f32.mxu0 %vm2292_vm0, %v2291_v0  ;;  %v2525_v5 = vld [vmem:[%s449_s29] sm:$0xff]  ;;  %v582_v7 = vld [vmem:[%s2775_s2 + $0x10] sm:$0xff]  ;;  %s2294_s18 = smov 120   ;;  %s2295_s20 = smov 104   ;;  %vm1333_vm3 = vcmask 130048   ;;  %vm1335_vm4 = vcmask 195584  }
  0x4b   : > { %1902 = vmatpush3.msra.mxu1 %v505_v1  ;;  %v581_v8 = vld [vmem:[%s2775_s2 + $0x8] sm:$0xff]  ;;  %v580_v9 = vld [vmem:[%s2775_s2] sm:$0xff]  ;;  %s2296_s16 = smov 96   ;;  %s2297_s24 = smov 80   ;;  %vm1544_vm5 = vcmask 523264  }
  0x4c   : > { %1903 = vmatprep.subr.mxu1 %v2291_v0  ;;  %s2298_s19 = smov 72   ;;  %s2299_s15 = smov 88  }
  0x4d   : > { %1904 = vmatpush3.msra.mxu1 %v504_v2  ;;  %s1821_s21 = sshll.u32 %s2491_s12, 5  ;;  %s2816_s23 = sld [smem:[#allocation23_spill]] }
  0x4e   : > { %1905 = vmatprep.subr.mxu1 %v2291_v0  ;;  %s2593_s17 = scalar_lea.vmem [#allocation8], %s1821_s21  ;;  %s1655_s6 = scalar_lea.sflag [#allocation9], %s2491_s12 }
  0x4f   : > { %1906 = vmatpush3.msra.mxu1 %v503_v3  ;;  %s2303_s29 = smov [#allocation8]  }
  0x50   : > { %1907 = vmatprep.subr.mxu1 %v2291_v0  ;;  %s2175_s9 = sshll.u32 %s2303_s29, 4  ;;  %s2176_s9 = int_to_ptr.vmem [resolvable:$false] %s2175_s9 }
  0x51   : > { %1908 = vmatpush3.msra.mxu1 %v502_v4 }
  0x52   : > { %1910 = vmatmul.mubr.msk.f32.vlgmr.msra.gmra.mxu1 %vm506_vm1, %v2525_v5  ;;  %1912 = vmatprep.subr.mxu1 %v2291_v0 }
  0x53   : > { %1913 = vmatpush3.msra.mxu1 %v583_v6  ;;  %1920 = vmatprep.mubr.msk.f32.mxu1 %vm2292_vm0, %v2291_v0 }
  0x54   : > { %1914 = vmatprep.subr.mxu1 %v2291_v0 }
  0x55   : > { %1915 = vmatpush3.msra.mxu1 %v582_v7 }
  0x56   : > { %1916 = vmatprep.subr.mxu1 %v2291_v0 }
  0x57   : > { %1917 = vmatpush3.msra.mxu1 %v581_v8  ;;  %v1340_v8 = vld [vmem:[%s2776_s3 + $0x18] sm:$0xff] }
  0x58   : > { %1918 = vmatprep.subr.mxu1 %v2291_v0 }
  0x59   : > { %1919 = vmatpush3.msra.mxu1 %v580_v9  ;;  %v1339_v9 = vld [vmem:[%s2776_s3 + $0x10] sm:$0xff] }
  0x5a   : > { %1921 = vmatmul.mubr.msk.f32.vlgmr.msra.gmra.mxu1 %vm506_vm1, %v2525_v5  ;;  %1928 = vmatprep.subr.mxu1 %v2291_v0 }
  0x5b   : > { %1930 = vmatprep.mubr.msk.f32.mxu1 %vm2292_vm0, %v2291_v0 }
 0x112   : > { %v576_v10 = vpop.f32.mrf.mxu1 }
 0x114   : > { %v1911_v11 = vpop.f32.mrf.mxu1 }
 0x115   : > { %v1337_v11 = vld [vmem:[%s2776_s3] sm:$0xff] }
 0x11a   : > { %v2553_v12 = vpop.f32.mrf.mxu1 }
 0x11b   : > { %988 = vrot.lane.b32.xlu1 %v2553_v12, %s2293_s10  ;;  %821 = vrot.lane.b32.xlu0 %v2553_v12, %s2294_s18 }
 0x11c   : > { %1924 = vmatpush3.xpose.msk.msra.mxu0 %vm654_vm2, %v2553_v12  ;;  %v1922_v13 = vpop.f32.mrf.mxu1 }
 0x11d   : > { %1933 = vmatprep.subr.mxu0 %v2291_v0 }
 0x11f   : > { %1926 = vmatmul.mubr.msk.f32.vlgmr.msra.gmra.mxu0 %vm654_vm2, %v576_v10  ;;  %986 = vrot.lane.b32.xlu1 %v576_v10, %s2293_s10 }
 0x120   : > { %819 = vrot.lane.b32.xlu0 %v576_v10, %s2294_s18  ;;  %1935 = vmatprep.mubr.msk.f32.mxu0 %vm2292_vm0, %v2291_v0 }
 0x123   : > { %1153 = vrot.lane.b32.xlu1 %v576_v10, %s2295_s20  ;;  %v1338_v10 = vld [vmem:[%s2776_s3 + $0x8] sm:$0xff] }
 0x124   : > { %1155 = vrot.lane.b32.xlu0 %v2553_v12, %s2295_s20  ;;  %s2300_s20 = smov 8  }
 0x18d   : > { %v822_v14 = vpop.permute.xlu0 %821  ;;  %v989_v15 = vpop.permute.xlu1 %988 }
 0x18e   : > { %1934 = vmatpush3.xpose.msk.msra.mxu0 %vm654_vm2, %v822_v14 }
 0x18f   : > { %1943 = vmatprep.subr.mxu0 %v2291_v0 }
 0x191   : > { %v987_v17 = vpop.permute.xlu1 %986 }
 0x192   : > { %v820_v16 = vpop.permute.xlu0 %819 }
 0x193   : > { %1936 = vmatmul.mubr.msk.f32.vlgmr.msra.gmra.mxu0 %vm654_vm2, %v820_v16 }
 0x194   : > { %1944 = vmatpush3.xpose.msk.msra.mxu0 %vm654_vm2, %v989_v15  ;;  %1945 = vmatprep.mubr.msk.f32.mxu0 %vm2292_vm0, %v2291_v0 }
 0x195   : > { %1953 = vmatprep.subr.mxu0 %v2291_v0  ;;  %v1154_v19 = vpop.permute.xlu1 %1153 }
 0x196   : > { %v1156_v18 = vpop.permute.xlu0 %1155 }
 0x197   : > { %1946 = vmatmul.mubr.msk.f32.vlgmr.msra.gmra.mxu0 %vm654_vm2, %v987_v17 }
 0x198   : > { %1954 = vmatpush3.xpose.msk.msra.mxu0 %vm654_vm2, %v1156_v18  ;;  %1955 = vmatprep.mubr.msk.f32.mxu0 %vm2292_vm0, %v2291_v0 }
 0x199   : > { %1963 = vmatprep.subr.mxu0 %v2291_v0 }
 0x19b   : > { %1956 = vmatmul.mubr.msk.f32.vlgmr.msra.gmra.mxu0 %vm654_vm2, %v1154_v19 }
 0x19c   : > { %1971 = vmatprep.mubr.msk.f32.mxu0 %vm2292_vm0, %v2291_v0  ;;  %1964 = vmatpush3.msra.mxu0 %v1340_v8 }
 0x19d   : > { %1965 = vmatprep.subr.mxu0 %v2291_v0 }
 0x19e   : > { %1966 = vmatpush3.msra.mxu0 %v1339_v9 }
 0x19f   : > { %1967 = vmatprep.subr.mxu0 %v2291_v0 }
 0x1a0   : > { %1968 = vmatpush3.msra.mxu0 %v1338_v10 }
 0x1a1   : > { %1969 = vmatprep.subr.mxu0 %v2291_v0 }
 0x1a2   : > { %1970 = vmatpush3.msra.mxu0 %v1337_v11 }
 0x1a3   : > { %1985 = vmatprep.subr.mxu0 %v2291_v0 }
 0x1df   : > { %v727_v20 = vpop.f32.mrf.mxu0 }
 0x1e0   : > { %v731_v21 = vsel %vm654_vm2, %v727_v20, -inf }
 0x1e1   : > { %732 = vmax.xlane.f32.xlu0 %v731_v21  ;;  %v1927_v22 = vpop.f32.mrf.mxu0 }
 0x253   : > { %v893_v23 = vpop.f32.mrf.mxu0 }
 0x254   : > { %v897_v24 = vsel %vm654_vm2, %v893_v23, -inf }
 0x255   : > { %898 = vmax.xlane.f32.xlu1 %v897_v24  ;;  %v1937_v25 = vpop.f32.mrf.mxu0 }
 0x257   : > { %v1060_v26 = vpop.f32.mrf.mxu0 }
 0x258   : > { %v1064_v27 = vsel %vm654_vm2, %v1060_v26, -inf }
 0x259   : > { %1065 = vmax.xlane.f32.xlu0 %v1064_v27  ;;  %v1947_v28 = vpop.f32.mrf.mxu0 }
 0x25b   : > { %v1227_v29 = vpop.f32.mrf.mxu0 }
 0x25c   : > { %v1231_v30 = vsel %vm654_vm2, %v1227_v29, -inf }
 0x25d   : > { %1232 = vmax.xlane.f32.xlu0 %v1231_v30  ;;  %v1957_v31 = vpop.f32.mrf.mxu0 }
 0x266   : > { %743 = vrot.lane.b32.xlu1 %v2553_v12, %s2296_s16  ;;  %s2301_s16 = smov 16  }
 0x26a   : > { %v733_v32 = vpop.xlane.xlu0 %732 }
 0x26b   : > { %v734_v33 = vsub.f32 %v727_v20, %v733_v32 }
 0x26d   : > { %v735_v34 = vmul.f32 1.442695, %v734_v33  ;;  %v1447_v33 = vld [vmem:[#allocation5 + $0x18] sm:$0xff] }
 0x26f   : > { %2097 = vpow2.f32 %v735_v34  ;;  %v1446_v34 = vld [vmem:[#allocation5 + $0x10] sm:$0xff] }
 0x27c   : > { %v2098_v35 = vpop.eup %2097 }
 0x27d   : > { %v737_v36 = vsel %vm654_vm2, %v2098_v35, 0.0 }
 0x28a   : > { %738 = vadd.xlane.f32.xlu1 %v737_v36  ;;  %v1536_v36 = vld [vmem:[%s2781_s8 + $0x38] sm:$0xff] }
 0x2de   : > { %v899_v37 = vpop.xlane.xlu1 %898 }
 0x2df   : > { %v900_v38 = vsub.f32 %v893_v23, %v899_v37  ;;  %v1535_v37 = vld [vmem:[%s2781_s8 + $0x30] sm:$0xff] }
 0x2e1   : > { %v901_v39 = vmul.f32 1.442695, %v900_v38  ;;  %v1534_v38 = vld [vmem:[%s2781_s8 + $0x28] sm:$0xff] }
 0x2e2   : > { %v744_v40 = vpop.permute.xlu1 %743  ;;  %v1066_v41 = vpop.xlane.xlu0 %1065 }
 0x2e3   : > { %2099 = vpow2.f32 %v901_v39  ;;  %v1067_v42 = vsub.f32 %v1060_v26, %v1066_v41  ;;  %1929 = vmatpush3.msra.mxu1 %v744_v40  ;;  %v1533_v39 = vld [vmem:[%s2781_s8 + $0x20] sm:$0xff]  ;;  %v1532_v40 = vld [vmem:[%s2781_s8 + $0x18] sm:$0xff] }
 0x2e4   : > { %1938 = vmatprep.subr.mxu1 %v2291_v0 }
 0x2e5   : > { %v1068_v43 = vmul.f32 1.442695, %v1067_v42 }
 0x2e6   : > { %v1233_v44 = vpop.xlane.xlu0 %1232 }
 0x2e7   : > { %2101 = vpow2.f32 %v1068_v43  ;;  %v1234_v45 = vsub.f32 %v1227_v29, %v1233_v44 }
 0x2e9   : > { %v1235_v46 = vmul.f32 1.442695, %v1234_v45  ;;  %v1840_v45 = vld [vmem:[%s2777_s4] ss:$0 sm:$0xff] }
 0x2eb   : > { %2103 = vpow2.f32 %v1235_v46 }
 0x2f0   : > { %v2100_v47 = vpop.eup %2099 }
 0x2f1   : > { %v903_v48 = vsel %vm654_vm2, %v2100_v47, 0.0 }
 0x2f2   : > { %904 = vadd.xlane.f32.xlu0 %v903_v48 }
 0x2f4   : > { %v2102_v49 = vpop.eup %2101 }
 0x2f5   : > { %v1070_v50 = vsel %vm654_vm2, %v2102_v49, 0.0 }
 0x2f6   : > { %1071 = vadd.xlane.f32.xlu1 %v1070_v50  ;;  %v1531_v50 = vld [vmem:[%s2781_s8 + $0x10] sm:$0xff] }
 0x2f8   : > { %v2104_v51 = vpop.eup %2103 }
 0x2f9   : > { %v1237_v52 = vsel %vm654_vm2, %v2104_v51, 0.0 }
 0x2fa   : > { %1238 = vadd.xlane.f32.xlu0 %v1237_v52  ;;  %v1529_v52 = vld [vmem:[%s2781_s8] sm:$0xff] }
 0x307   : > { %1077 = vrot.lane.b32.xlu1 %v2553_v12, %s2297_s24  ;;  %s2302_s24 = smov 24  }
 0x30b   : > { %1244 = vrot.lane.b32.xlu1 %v2553_v12, %s2298_s19  ;;  %s1683_s19 = sshll.u32 %s2593_s17, 4  ;;  %s2698_s19 = int_to_ptr.vmem [resolvable:$true] %s1683_s19 }
 0x30c   : > { %s2171_s25 = scalar_lea.vmem %s2698_s19, 512  ;;  %p2178_p0 = scmp.lt.s32.totalorder %s2698_s19, %s2176_s9 }
 0x30d   : > { %p2172_p1 = scmp.ne.s32.totalorder %s2698_s19, %s2171_s25 }
 0x30f   : > { %p2173_p8 = pnand %p2172_p1, %p2463_p13 }
 0x310   : > { %910 = vrot.lane.b32.xlu0 %v2553_v12, %s2299_s15 }
 0x311   : > { %p2174_p10 = pneg %p2173_p8 }
 0x313   : > { %v739_v53 = vpop.xlane.xlu1 %738 }
 0x314   : > { %2105 = vrcp.f32 %v739_v53  ;;  %v1842_v53 = vld [vmem:[%s2780_s7] ss:$0 sm:$0xff] }
 0x321   : > { %v2106_v54 = vpop.eup %2105 }
 0x322   : > { %v741_v55 = vmul.f32 %v2106_v54, %v2098_v35  ;;  %v1445_v35 = vld [vmem:[#allocation5 + $0x8] sm:$0xff] }
 0x324   : > { %742 = vst.msk [vmem:[%s2593_s17] sm:$0xff] %vm654_vm2, %v741_v55  ;;  %1931 = vmatmul.mubr.msk.f32.vlgmr.msra.gmra.mxu1 %vm654_vm2, %v741_v55 }
 0x325   : > { %1940 = vmatprep.mubr.msk.f32.mxu1 %vm2292_vm0, %v2291_v0 }
 0x37b   : > { %v905_v56 = vpop.xlane.xlu0 %904 }
 0x37c   : > { %2107 = vrcp.f32 %v905_v56 }
 0x37f   : > { %v1072_v57 = vpop.xlane.xlu1 %1071 }
 0x380   : > { %2109 = vrcp.f32 %v1072_v57 }
 0x383   : > { %v1239_v58 = vpop.xlane.xlu0 %1238  ;;  %v1078_v61 = vpop.permute.xlu1 %1077 }
 0x384   : > { %2111 = vrcp.f32 %v1239_v58 }
 0x387   : > { %v911_v59 = vpop.permute.xlu0 %910  ;;  %v1245_v2 = vpop.permute.xlu1 %1244 }
 0x388   : > { %1939 = vmatpush3.msra.mxu1 %v911_v59 }
 0x389   : > { %v2108_v60 = vpop.eup %2107  ;;  %1948 = vmatprep.subr.mxu1 %v2291_v0 }
 0x38a   : > { %v907_v62 = vmul.f32 %v2108_v60, %v2100_v47  ;;  %v1841_v47 = vld [vmem:[%s2778_s5] ss:$0 sm:$0xff] }
 0x38c   : > { %1829 = vst.msk [vmem:[%s2593_s17 + $0x8] sm:$0xff] %vm654_vm2, %v907_v62  ;;  %1941 = vmatmul.mubr.msk.f32.vlgmr.msra.gmra.mxu1 %vm654_vm2, %v907_v62 }
 0x38d   : > { %v2110_v63 = vpop.eup %2109  ;;  %1949 = vmatpush3.msra.mxu1 %v1078_v61  ;;  %1950 = vmatprep.mubr.msk.f32.mxu1 %vm2292_vm0, %v2291_v0 }
 0x38e   : > { %1958 = vmatprep.subr.mxu1 %v2291_v0  ;;  %v1074_v1 = vmul.f32 %v2110_v63, %v2102_v49 }
 0x390   : > { %1833 = vst.msk [vmem:[%s2593_s17 + $0x10] sm:$0xff] %vm654_vm2, %v1074_v1  ;;  %1951 = vmatmul.mubr.msk.f32.vlgmr.msra.gmra.mxu1 %vm654_vm2, %v1074_v1 }
 0x391   : > { %v2112_v3 = vpop.eup %2111  ;;  %1959 = vmatpush3.msra.mxu1 %v1245_v2  ;;  %1960 = vmatprep.mubr.msk.f32.mxu1 %vm2292_vm0, %v2291_v0 }
 0x392   : > { %v1241_v4 = vmul.f32 %v2112_v3, %v2104_v51  ;;  %1974 = vmatprep.subr.mxu1 %v2291_v0  ;;  %v1530_v51 = vld [vmem:[%s2781_s8 + $0x8] sm:$0xff] }
 0x394   : > { %1837 = vst.msk [vmem:[%s2593_s17 + $0x18] sm:$0xff] %vm654_vm2, %v1241_v4  ;;  %1961 = vmatmul.mubr.msk.f32.vlgmr.msra.gmra.mxu1 %vm654_vm2, %v1241_v4  ;;  %s2177_s17 = scalar_lea.vmem %s2176_s9, 1024 }
 0x395   : > { %1982 = vmatprep.mubr.msk.f32.mxu1 %vm2292_vm0, %v2291_v0  ;;  %1975 = vmatpush3.msra.mxu1 %v1447_v33  ;;  %p2179_p2 = scmp.lt.s32.totalorder %s2177_s17, %s2171_s25 }
 0x396   : > { %1976 = vmatprep.subr.mxu1 %v2291_v0 }
 0x397   : > { %1977 = vmatpush3.msra.mxu1 %v1446_v34  ;;  %p2180_p3 = por %p2179_p2, %p2178_p0 }
 0x398   : > { %1978 = vmatprep.subr.mxu1 %v2291_v0 }
 0x399   : > { %1979 = vmatpush3.msra.mxu1 %v1445_v35  ;;  %p2181_p5 = pnand %p2180_p3, %p2174_p10 }
 0x39a   : > { %1980 = vmatprep.subr.mxu1 %v2291_v0 }
 0x3e4   : > { %v815_v6 = vpop.f32.mrf.mxu1 }
 0x3e6   : > { %v1932_v7 = vpop.f32.mrf.mxu1 }
 0x44c   : > { %v982_v12 = vpop.f32.mrf.mxu1 }
 0x44d   : > { %1321 = vrot.lane.b32.xlu0 %v982_v12, %s2300_s20 }
 0x44e   : > { %v1942_v13 = vpop.f32.mrf.mxu1 }
 0x450   : > { %v1149_v14 = vpop.f32.mrf.mxu1 }
 0x451   : > { %1325 = vrot.lane.b32.xlu1 %v1149_v14, %s2301_s16  ;;  %s2815_s16 = sld [smem:[#allocation19_spill]] }
 0x452   : > { %v1952_v15 = vpop.f32.mrf.mxu1 }
 0x454   : > { %v1316_v16 = vpop.f32.mrf.mxu1 }
 0x455   : > { %1329 = vrot.lane.b32.xlu0 %v1316_v16, %s2302_s24  ;;  %s1855_s24 = sshll.u32 %s2277_s28, 9 }
 0x456   : > { %v1962_v17 = vpop.f32.mrf.mxu1  ;;  %s2696_s14 = scalar_lea.hbm %s2816_s23, %s1855_s24 }
 0x457   : > { %v1844_v58 = vld [vmem:[%s2815_s16] ss:$0 sm:$0xff] }
 0x4bf   : > { %v1322_v18 = vpop.permute.xlu0 %1321 }
 0x4c0   : > { %v1332_v20 = vsel %vm654_vm2, %v815_v6, %v1322_v18 }
 0x4c3   : > { %v1326_v19 = vpop.permute.xlu1 %1325 }
 0x4c4   : > { %v1334_v21 = vsel %vm1333_vm3, %v1332_v20, %v1326_v19 }
 0x4c7   : > { %v1330_v22 = vpop.permute.xlu0 %1329 }
 0x4c8   : > { %v1336_v23 = vsel %vm1335_vm4, %v1334_v21, %v1330_v22 }
 0x4c9   : > { %1972 = vmatmul.mubr.msk.f32.vlgmr.msra.gmra.mxu0 %vm506_vm1, %v1336_v23 }
 0x4ca   : > { %2001 = vmatprep.mubr.msk.f32.mxu0 %vm2292_vm0, %v2291_v0  ;;  %1986 = vmatpush3.msra.mxu0 %v1536_v36 }
 0x4cb   : > { %1987 = vmatprep.subr.mxu0 %v2291_v0 }
 0x4cc   : > { %1988 = vmatpush3.msra.mxu0 %v1535_v37 }
 0x4cd   : > { %1989 = vmatprep.subr.mxu0 %v2291_v0 }
 0x4ce   : > { %1990 = vmatpush3.msra.mxu0 %v1534_v38 }
 0x4cf   : > { %1991 = vmatprep.subr.mxu0 %v2291_v0 }
 0x4d0   : > { %1992 = vmatpush3.msra.mxu0 %v1533_v39 }
 0x4d1   : > { %1993 = vmatprep.subr.mxu0 %v2291_v0 }
 0x4d2   : > { %1994 = vmatpush3.msra.mxu0 %v1532_v40 }
 0x4d3   : > { %1995 = vmatprep.subr.mxu0 %v2291_v0 }
 0x4d4   : > { %1996 = vmatpush3.msra.mxu0 %v1531_v50 }
 0x4d5   : > { %1997 = vmatprep.subr.mxu0 %v2291_v0 }
 0x4d6   : > { %1998 = vmatpush3.msra.mxu0 %v1530_v51 }
 0x4d7   : > { %1999 = vmatprep.subr.mxu0 %v2291_v0 }
 0x4d8   : > { %2000 = vmatpush3.msra.mxu0 %v1529_v52 }
 0x589   : > { %v1410_v24 = vpop.f32.mrf.mxu0 }
 0x58a   : > { %v1411_v25 = vadd.f32 %v1410_v24, %v2525_v5  ;;  %v1444_v5 = vld [vmem:[#allocation5] sm:$0xff] }
 0x58b   : > { %v1973_v26 = vpop.f32.mrf.mxu0  ;;  %1981 = vmatpush3.msra.mxu1 %v1444_v5 }
 0x58c   : > { %v1414_v27 = vsel %vm506_vm1, %v1411_v25, 0.0 }
 0x58d   : > { %1415 = vadd.xlane.f32.xlu1 %v1414_v27 }
 0x616   : > { %v1416_v28 = vpop.xlane.xlu1 %1415 }
 0x617   : > { %v1418_v29 = vmul.f32 0.03125, %v1416_v28 }
 0x619   : > { %v1419_v30 = vsub.f32 %v1411_v25, %v1418_v29 }
 0x61b   : > { %v1420_v31 = vmul.f32 %v1419_v30, %v1419_v30 }
 0x61d   : > { %v1421_v32 = vsel %vm506_vm1, %v1420_v31, 0.0 }
 0x61e   : > { %1422 = vadd.xlane.f32.xlu0 %v1421_v32 }
 0x6a7   : > { %v1423_v41 = vpop.xlane.xlu0 %1422 }
 0x6a8   : > { %v1424_v42 = vmul.f32 0.03125, %v1423_v41 }
 0x6aa   : > { %v1425_v43 = vadd.f32 1e-06, %v1424_v42 }
 0x6ac   : > { %2113 = vrsqrt.f32 %v1425_v43 }
 0x6b9   : > { %v2114_v44 = vpop.eup %2113 }
 0x6ba   : > { %v1427_v46 = vmul.f32 %v2114_v44, %v1419_v30 }
 0x6bc   : > { %v1435_v48 = vmul.f32 %v1840_v45, %v1427_v46 }
 0x6be   : > { %v1443_v49 = vadd.f32 %v1841_v47, %v1435_v48 }
 0x6c0   : > { %1983 = vmatmul.mubr.msk.f32.vlgmr.msra.gmra.mxu1 %vm506_vm1, %v1443_v49 }
 0x780   : > { %v1524_v54 = vpop.f32.mrf.mxu1 }
 0x781   : > { %v1525_v55 = vadd.f32 %v1842_v53, %v1524_v54 }
 0x782   : > { %v1984_v56 = vpop.f32.mrf.mxu1 }
 0x783   : > { %v1528_v57 = vmax.f32 %v1525_v55, 0.0 }
 0x785   : > { %2002 = vmatmul.mubr.msk.f32.vlgmr.msra.gmra.mxu0 %vm1544_vm5, %v1528_v57 }
 0x845   : > { %v1614_v59 = vpop.f32.mrf.mxu0 }
 0x846   : > { %v1615_v0 = vadd.f32 %v1844_v58, %v1614_v59 }
 0x847   : > { %v2003_v60 = vpop.f32.mrf.mxu0 }
 0x848   : > { %v1618_v61 = vadd.f32 %v1615_v0, %v1443_v49 }
 0x84a   : > { %v1619_v62 = vsel %vm506_vm1, %v1618_v61, 0.0 }
 0x84b   : > { %1620 = vadd.xlane.f32.xlu0 %v1619_v62 }
 0x8d4   : > { %v1621_v63 = vpop.xlane.xlu0 %1620 }
 0x8d5   : > { %v1622_v1 = vmul.f32 0.03125, %v1621_v63 }
 0x8d7   : > { %v1623_v2 = vsub.f32 %v1618_v61, %v1622_v1 }
 0x8d9   : > { %v1624_v3 = vmul.f32 %v1623_v2, %v1623_v2 }
 0x8db   : > { %v1625_v4 = vsel %vm506_vm1, %v1624_v3, 0.0 }
 0x8dc   : > { %1626 = vadd.xlane.f32.xlu1 %v1625_v4 }
 0x8dd   : > { %2184 = shalt.err (!%p2181_p5)
}
 0x8de   : > { %s2185_s10 = scalar_lea.hbm %s2696_s14, 512  ;;  %s2189_s24 = scalar_lea.hbm %s2816_s23, 1024 }
 0x8df   : > { %p2186_p7 = scmp.ne.s32.totalorder %s2696_s14, %s2185_s10  ;;  %p2190_p9 = scmp.lt.s32.totalorder %s2696_s14, %s2816_s23 }
 0x8e0   : > { %p2191_p11 = scmp.lt.s32.totalorder %s2189_s24, %s2185_s10 }
 0x8e1   : > { %p2187_p6 = pnand %p2186_p7, %p2463_p13 }
 0x8e2   : > { %p2192_p12 = por %p2191_p11, %p2190_p9 }
 0x8e3   : > { %p2188_p4 = pneg %p2187_p6 }
 0x8e5   : > { %p2193_p1 = pnand %p2192_p12, %p2188_p4 }
 0x8e7   : > { %2196 = shalt.err (!%p2193_p1)
}
 0x8e8   : > { %s2304_s25 = smov 128   ;;  %s2817_s17 = sld [smem:[#allocation20_spill]] }
 0x8e9   : > { %2011 = dma.vmem_to_hbm [thread:$0]  (%p2463_p13), %s2698_s19, 512, %s2696_s14, %s1655_s6, %s2304_s25, %s2304_s25, %s2300_s20  }
 0x8ea   : > { %s2818_s16 = sld [smem:[#allocation21_spill]]  ;;  %s1850_s24 = sshll.u32 %s2277_s28, 7 }
 0x8eb   : > { %s493_s15 = scalar_lea.vmem [#allocation7], %s1818_s13  ;;  %s2819_s6 = sld [smem:[#allocation22_spill]] }
 0x8ec   : > { %s1669_s20 = sshll.u32 %s493_s15, 4  ;;  %s1650_s25 = scalar_lea.sflag [#allocation4], %s2491_s12  ;;  %s1670_s20 = int_to_ptr.vmem [resolvable:$true] %s1669_s20 }
 0x8ed   : > { %s2197_s29 = scalar_lea.vmem %s1670_s20, 128  ;;  %s2305_s9 = smov [#allocation7]  }
 0x8ee   : > { %v1846_v10 = vld [vmem:[%s2817_s17] ss:$0 sm:$0xff]  ;;  %p2198_p8 = scmp.ne.s32.totalorder %s1670_s20, %s2197_s29  ;;  %s2201_s28 = sshll.u32 %s2305_s9, 4  ;;  %s2202_s28 = int_to_ptr.vmem [resolvable:$false] %s2201_s28 }
 0x8ef   : > { %s2203_s13 = scalar_lea.vmem %s2202_s28, 256  ;;  %p2204_p2 = scmp.lt.s32.totalorder %s1670_s20, %s2202_s28 }
 0x8f0   : > { %v1847_v12 = vld [vmem:[%s2818_s16] ss:$0 sm:$0xff]  ;;  %p2199_p10 = pnand %p2198_p8, %p2463_p13  ;;  %p2205_p3 = scmp.lt.s32.totalorder %s2203_s13, %s2197_s29 }
 0x8f1   : > { %s1667_s21 = scalar_lea.hbm %s2819_s6, %s1850_s24 }
 0x8f2   : > { %p2200_p0 = pneg %p2199_p10  ;;  %p2206_p5 = por %p2205_p3, %p2204_p2 }
 0x8f4   : > { %p2207_p7 = pnand %p2206_p5, %p2200_p0 }
 0x965   : > { %v1627_v6 = vpop.xlane.xlu1 %1626 }
 0x966   : > { %v1628_v7 = vmul.f32 0.03125, %v1627_v6 }
 0x968   : > { %v1629_v8 = vadd.f32 1e-06, %v1628_v7 }
 0x96a   : > { %2115 = vrsqrt.f32 %v1629_v8 }
 0x977   : > { %v2116_v9 = vpop.eup %2115 }
 0x978   : > { %v1631_v11 = vmul.f32 %v2116_v9, %v1623_v2 }
 0x97a   : > { %v1639_v13 = vmul.f32 %v1846_v10, %v1631_v11 }
 0x97c   : > { %v1647_v14 = vadd.f32 %v1847_v12, %v1639_v13 }
 0x97e   : > { %1648 = vst.msk [vmem:[%s493_s15] sm:$0xff] %vm506_vm1, %v1647_v14 }
 0x97f   : > { %2210 = shalt.err (!%p2207_p7)
}
 0x980   : > { %s2211_s17 = scalar_lea.hbm %s1667_s21, 128  ;;  %s2215_s18 = scalar_lea.hbm %s2819_s6, 256 }
 0x981   : > { %p2212_p6 = scmp.ne.s32.totalorder %s1667_s21, %s2211_s17  ;;  %p2216_p11 = scmp.lt.s32.totalorder %s1667_s21, %s2819_s6 }
 0x982   : > { %p2217_p12 = scmp.lt.s32.totalorder %s2215_s18, %s2211_s17 }
 0x983   : > { %p2213_p4 = pnand %p2212_p6, %p2463_p13 }
 0x984   : > { %p2218_p1 = por %p2217_p12, %p2216_p11 }
 0x985   : > { %p2214_p9 = pneg %p2213_p4 }
 0x987   : > { %p2219_p8 = pnand %p2218_p1, %p2214_p9 }
 0x989   : > { %2222 = shalt.err (!%p2219_p8)
}
 0x98a   : > { %2010 = dma.vmem_to_hbm [thread:$0]  (%p2463_p13), %s1670_s20, 128, %s1667_s21, %s1650_s25  }
 0x98b PF: > { %s2820_s15 = sld [smem:[#allocation14_spill]]  ;;  %p2823_p0 = scmp.ge.s32.totalorder %s2285_s30, 2 }
 0x98c   : > { %s2821_s19 = sld [smem:[#allocation16_spill]] }
 0x991   : > { %s1698_s14 = sand.u32 1, %s2820_s15  }
 0x992   : > { %p2822_p10 = scmp.ne.s32.totalorder %s2821_s19, 0  ;;  %s1699_s29 = scalar_lea.sflag [#allocation4], %s1698_s14 }
 0x994   : > { %p2023_p2 = pnand %p2823_p0, %p2822_p10 }
 0x996   : > { %p2024_p3 = pneg %p2023_p2 }
 0x998   : > { %2256 = dma.done.wait (%p2024_p3), %s1699_s29, 128  }
 0x999   : > { %2258 = vsyncadd (%p2024_p3), %s1699_s29, 4294967168  ;;  %s1708_s9 = scalar_lea.sflag [#allocation9], %s1698_s14 }
 0x99a   : > { %2260 = dma.done.wait (%p2024_p3), %s1708_s9, 512  }
 0x99b   : > { %2262 = vsyncadd (%p2024_p3), %s1708_s9, 4294966784  ;;  %s34_s30 = sadd.s32 1, %s2285_s30   ;;  %s2824_s28 = sld [smem:[#allocation15_spill]] }
 0x99c   : > { %p31_p5 = scmp.ge.s32.totalorder %s34_s30, 4   ;;  %s2825_s29 = sld [smem:[#allocation17_spill]] }
 0x99d   : > { %s2826_s25 = smov %s2269_s26  ;;  %s2827_s26 = smov %s2273_s27 }
 0x99e   : > { %s2828_s27 = smov %s2472_s22  ;;  %33 = sbr.rel (!%p31_p5) target bundleno = 16 (0x10), region = 137 }
 0x9a3   :  { %1713 = vsyncpa [#allocation3], 1 }
 0x9a4   :  { %1715 = vsyncpa [#allocation3 + $0x1], 1 }
 0x9a5   :  { %1716 = vsyncpa [#allocation6], 1 }
 0x9a6   :  { %1717 = vsyncpa [#allocation4], 1 }
 0x9a7   :  { %1719 = vsyncpa [#allocation4 + $0x1], 1 }
 0x9a8   :  { %1720 = vsyncpa [#allocation9], 1 }
 0x9a9   :  { %1722 = vsyncpa [#allocation9 + $0x1], 1 }

</bundles_post_ra>
